<compile_context>
chip_gen: v5e
topology: v5e:2x2
jax: 0.10.0
libtpu: 0.0.40
codegen_flags: <defaults>
</compile_context>

<pallas_src>
import functools

import jax
import jax.numpy as jnp
from jax.experimental import pallas as pl
from jax.experimental.pallas import tpu as pltpu

LANE = 128     # TPU lane width
SUBLANE = 8    # TPU sublane count (f32)


def _round_up(x, m):
    return ((x + m - 1) // m) * m


def cirl_policy_kernel(x_ref, w1_ref, b1_ref, w2_ref, b2_ref, w3t_ref, b3t_ref,
                       out_ref):
    """One batch tile: two ReLU layers + transposed tanh output layer."""
    mm_dtype = w1_ref.dtype  # f32 or bf16 (chosen by the wrapper)

    # Layer 1: Linear(state_dim -> H1) + ReLU   (MXU matmul, f32 accumulate)
    h1 = jnp.dot(x_ref[...], w1_ref[...], preferred_element_type=jnp.float32)
    h1 = jnp.maximum(h1 + b1_ref[...], 0.0)                 # f32 epilogue (VPU)

    # Layer 2: Linear(H1 -> H2) + ReLU
    h2 = jnp.dot(h1.astype(mm_dtype), w2_ref[...],
                 preferred_element_type=jnp.float32)
    h2 = jnp.maximum(h2 + b2_ref[...], 0.0)

    # Output layer (transposed): y_t = W3t(8,H2) @ h2^T(H2,tb), then tanh.
    # The (tb, H2) -> (H2, tb) transpose uses the XLU (idle here); the store
    # is a dense (8, tb) block -> 16x less output HBM traffic than (tb, 128).
    h2_t = h2.T.astype(mm_dtype)
    y_t = jnp.dot(w3t_ref[...], h2_t, preferred_element_type=jnp.float32)
    out_ref[...] = jnp.tanh(y_t + b3t_ref[...])              # b3t: (8,1) lane-bcast


@functools.partial(jax.jit, static_argnames=("block_batch", "use_bf16_matmul"))
def cirl_policy_forward(state, params, *, block_batch=1024,
                        use_bf16_matmul=True):
    """Fused CIRL policy network forward pass.

    state:  (batch, state_dim) array (cast like torch's .float()).
    params: dict with w1 (S,H1), b1 (H1,), w2 (H1,H2), b2 (H2,), w3 (H2,6), b3 (6,).
    Returns: (batch, 6) float32 PID gains in [-1, 1].
    """
    batch, state_dim = state.shape
    h1_dim = params["w1"].shape[1]
    h2_dim = params["w2"].shape[1]
    out_dim = params["w3"].shape[1]
    out_rows = SUBLANE                                   # 6 outputs -> 8 sublanes

    mm_dtype = jnp.bfloat16 if use_bf16_matmul else jnp.float32

    # --- parameter prep (outside kernel; constant-folded under jit) ---------
    w1 = params["w1"].astype(mm_dtype)
    w2 = params["w2"].astype(mm_dtype)
    # Output weights transposed & sublane-padded: (8, H2); rows 6..7 are zero
    # (their tanh(bias)=tanh(0)=0 rows are sliced off below).
    w3t = jnp.zeros((out_rows, h2_dim), mm_dtype).at[:out_dim, :].set(
        params["w3"].astype(mm_dtype).T)
    b1 = params["b1"].astype(jnp.float32).reshape(1, h1_dim)
    b2 = params["b2"].astype(jnp.float32).reshape(1, h2_dim)
    b3t = jnp.zeros((out_rows, 1), jnp.float32).at[:out_dim, 0].set(
        params["b3"].astype(jnp.float32))

    # --- batch tiling --------------------------------------------------------
    # Tiles are 128-aligned (output/lane axis & transpose alignment); once the
    # batch exceeds 64 rows, guarantee >= 2 grid steps so "parallel" can shard
    # across both v7x TensorCores (harmless single-TC no-op on v5e/v6e).
    if batch <= 64:
        tb = LANE
        padded_batch = LANE
    else:
        tb = min(block_batch, _round_up(-(-batch // 2), LANE))
        padded_batch = max(_round_up(batch, tb), 2 * tb)
    grid = (padded_batch // tb,)

    x = state.astype(mm_dtype)          # bf16 input feed when bf16 matmuls on
    if padded_batch != batch:
        x = jnp.pad(x, ((0, padded_batch - batch), (0, 0)))

    const = lambda shape: pl.BlockSpec(shape, lambda i: (0,) * len(shape))

    flops = 2 * padded_batch * (state_dim * h1_dim + h1_dim * h2_dim
                                + h2_dim * out_rows)
    bytes_accessed = (
        x.size * x.dtype.itemsize
        + sum(a.size * a.dtype.itemsize for a in (w1, b1, w2, b2, w3t, b3t))
        + out_rows * padded_batch * 4)

    out_t = pl.pallas_call(
        cirl_policy_kernel,
        out_shape=jax.ShapeDtypeStruct((out_rows, padded_batch), jnp.float32),
        grid=grid,
        in_specs=[
            pl.BlockSpec((tb, state_dim), lambda i: (i, 0)),   # state: tiled
            const((state_dim, h1_dim)), const((1, h1_dim)),    # w1, b1: resident
            const((h1_dim, h2_dim)), const((1, h2_dim)),       # w2, b2
            const((out_rows, h2_dim)), const((out_rows, 1)),   # w3^T (8,H2), b3^T (8,1)
        ],
        out_specs=pl.BlockSpec((out_rows, tb), lambda i: (0, i)),  # (8, tb) lane-dense
        compiler_params=pltpu.CompilerParams(
            dimension_semantics=("parallel",)),                # 2 TCs on v7x
        cost_estimate=pl.CostEstimate(
            flops=flops,
            transcendentals=out_rows * padded_batch,
            bytes_accessed=bytes_accessed),
    )(x, w1, b1, w2, b2, w3t, b3t)

    # Dense slice of the valid 6 rows / batch columns, then a tiny transpose.
    return out_t[:out_dim, :batch].T


def init_params(key, state_dim, hidden_dims=(128, 128), out_dim=6):
    """Deterministic PyTorch-style (uniform +-1/sqrt(fan_in)) init."""
    ks = jax.random.split(key, 6)

    def linear_init(kw, kb, fan_in, fan_out):
        bound = 1.0 / jnp.sqrt(fan_in)
        w = jax.random.uniform(kw, (fan_in, fan_out), jnp.float32, -bound, bound)
        b = jax.random.uniform(kb, (fan_out,), jnp.float32, -bound, bound)
        return w, b

    w1, b1 = linear_init(ks[0], ks[1], state_dim, hidden_dims[0])
    w2, b2 = linear_init(ks[2], ks[3], hidden_dims[0], hidden_dims[1])
    w3, b3 = linear_init(ks[4], ks[5], hidden_dims[1], out_dim)
    return {"w1": w1, "b1": b1, "w2": w2, "b2": b2, "w3": w3, "b3": b3}


def reference_forward(state, params):
    x = state.astype(jnp.float32)
    x = jnp.maximum(x @ params["w1"] + params["b1"], 0.0)
    x = jnp.maximum(x @ params["w2"] + params["b2"], 0.0)
    return jnp.tanh(x @ params["w3"] + params["b3"])


# TODO(synk): save()/load() checkpoint I/O from the torch module is host-side
# file handling with no Pallas equivalent; omitted.

if __name__ == "__main__":
    key = jax.random.PRNGKey(0)
    k_param, k_state1, k_state2 = jax.random.split(key, 3)

    state_dim = 16
    params = init_params(k_param, state_dim, hidden_dims=(128, 128), out_dim=6)

    # Small batch (single 128-row tile), f32 matmul path — tight check.
    state = jax.random.normal(k_state1, (8, state_dim), jnp.float32)
    out = jax.block_until_ready(
        cirl_policy_forward(state, params, use_bf16_matmul=False))
    ref = reference_forward(state, params)
    assert out.shape == (8, 6)
    assert jnp.allclose(out, ref, atol=1e-3, rtol=1e-3), "f32 mismatch vs reference"

    # Larger batch: multi-step grid (>=2 tiles), batch padding, default bf16 path.
    state_big = jax.random.normal(k_state2, (260, state_dim), jnp.float32)
    out_big = jax.block_until_ready(cirl_policy_forward(state_big, params))
    ref_big = reference_forward(state_big, params)
    assert out_big.shape == (260, 6)
    assert jnp.allclose(out_big, ref_big, atol=2e-2, rtol=2e-2), "bf16 mismatch vs reference"

    print("KERNEL_OK")
</pallas_src>

<mosaic_0001>
module attributes {stable_mosaic.version = 11 : i64} {
  func.func @cirl_policy_kernel(%arg0: i32, %arg1: memref<128x16xf32, #tpu.memory_space<vmem>>, %arg2: memref<16x128xf32, #tpu.memory_space<vmem>>, %arg3: memref<1x128xf32, #tpu.memory_space<vmem>>, %arg4: memref<128x128xf32, #tpu.memory_space<vmem>>, %arg5: memref<1x128xf32, #tpu.memory_space<vmem>>, %arg6: memref<8x128xf32, #tpu.memory_space<vmem>>, %arg7: memref<8x1xf32, #tpu.memory_space<vmem>>, %arg8: memref<8x128xf32, #tpu.memory_space<vmem>>) attributes {dimension_semantics = [#tpu.dimension_semantics<parallel>], iteration_bounds = array<i64: 1>, scalar_prefetch = 0 : i64, scratch_operands = 0 : i64, tpu.core_type = #tpu.core_type<tc>, window_params = [{transform_indices = @transform_0, window_bounds = array<i64: 128, 16>}, {pipeline_mode = #tpu.pipeline_mode<synchronous>, transform_indices = @transform_1, window_bounds = array<i64: 16, 128>}, {pipeline_mode = #tpu.pipeline_mode<synchronous>, transform_indices = @transform_2, window_bounds = array<i64: 1, 128>}, {pipeline_mode = #tpu.pipeline_mode<synchronous>, transform_indices = @transform_3, window_bounds = array<i64: 128, 128>}, {pipeline_mode = #tpu.pipeline_mode<synchronous>, transform_indices = @transform_4, window_bounds = array<i64: 1, 128>}, {pipeline_mode = #tpu.pipeline_mode<synchronous>, transform_indices = @transform_5, window_bounds = array<i64: 8, 128>}, {pipeline_mode = #tpu.pipeline_mode<synchronous>, transform_indices = @transform_6, window_bounds = array<i64: 8, 1>}, {transform_indices = @transform_7, window_bounds = array<i64: 8, 128>}]} {
    %c0 = arith.constant 0 : index
    %c0_0 = arith.constant 0 : index
    %0 = vector.load %arg1[%c0, %c0_0] : memref<128x16xf32, #tpu.memory_space<vmem>>, vector<128x16xf32>
    %c0_1 = arith.constant 0 : index
    %c0_2 = arith.constant 0 : index
    %1 = vector.load %arg2[%c0_1, %c0_2] : memref<16x128xf32, #tpu.memory_space<vmem>>, vector<16x128xf32>
    %cst = arith.constant dense<0.000000e+00> : vector<128x128xf32>
    %2 = tpu.matmul %0, %1, %cst {dimension_numbers = #tpu.dot_dimension_numbers<[1], [0], [0], [1], [0, 0, 1, 1], [], []>} : vector<128x16xf32>, vector<16x128xf32>, vector<128x128xf32> -> vector<128x128xf32>
    %c0_3 = arith.constant 0 : index
    %c0_4 = arith.constant 0 : index
    %3 = vector.load %arg3[%c0_3, %c0_4] : memref<1x128xf32, #tpu.memory_space<vmem>>, vector<1x128xf32>
    %4 = vector.broadcast %3 : vector<1x128xf32> to vector<128x128xf32>
    %5 = arith.addf %2, %4 : vector<128x128xf32>
    %cst_5 = arith.constant 0.000000e+00 : f32
    %6 = vector.broadcast %cst_5 : f32 to vector<128x128xf32>
    %7 = arith.maximumf %5, %6 : vector<128x128xf32>
    %c0_6 = arith.constant 0 : index
    %c0_7 = arith.constant 0 : index
    %8 = vector.load %arg4[%c0_6, %c0_7] : memref<128x128xf32, #tpu.memory_space<vmem>>, vector<128x128xf32>
    %cst_8 = arith.constant dense<0.000000e+00> : vector<128x128xf32>
    %9 = tpu.matmul %7, %8, %cst_8 {dimension_numbers = #tpu.dot_dimension_numbers<[1], [0], [0], [1], [0, 0, 1, 1], [], []>} : vector<128x128xf32>, vector<128x128xf32>, vector<128x128xf32> -> vector<128x128xf32>
    %c0_9 = arith.constant 0 : index
    %c0_10 = arith.constant 0 : index
    %10 = vector.load %arg5[%c0_9, %c0_10] : memref<1x128xf32, #tpu.memory_space<vmem>>, vector<1x128xf32>
    %11 = vector.broadcast %10 : vector<1x128xf32> to vector<128x128xf32>
    %12 = arith.addf %9, %11 : vector<128x128xf32>
    %cst_11 = arith.constant 0.000000e+00 : f32
    %13 = vector.broadcast %cst_11 : f32 to vector<128x128xf32>
    %14 = arith.maximumf %12, %13 : vector<128x128xf32>
    %15 = tpu.transpose %14, [1, 0] : vector<128x128xf32> -> vector<128x128xf32>
    %c0_12 = arith.constant 0 : index
    %c0_13 = arith.constant 0 : index
    %16 = vector.load %arg6[%c0_12, %c0_13] : memref<8x128xf32, #tpu.memory_space<vmem>>, vector<8x128xf32>
    %cst_14 = arith.constant dense<0.000000e+00> : vector<8x128xf32>
    %17 = tpu.matmul %16, %15, %cst_14 {dimension_numbers = #tpu.dot_dimension_numbers<[1], [0], [0], [1], [0, 0, 1, 1], [], []>} : vector<8x128xf32>, vector<128x128xf32>, vector<8x128xf32> -> vector<8x128xf32>
    %c0_15 = arith.constant 0 : index
    %c0_16 = arith.constant 0 : index
    %18 = vector.load %arg7[%c0_15, %c0_16] : memref<8x1xf32, #tpu.memory_space<vmem>>, vector<8x1xf32>
    %19 = vector.broadcast %18 : vector<8x1xf32> to vector<8x128xf32>
    %20 = arith.addf %17, %19 : vector<8x128xf32>
    %21 = math.tanh %20 : vector<8x128xf32>
    %c0_17 = arith.constant 0 : index
    %c0_18 = arith.constant 0 : index
    %22 = vector.load %arg8[%c0_17, %c0_18] : memref<8x128xf32, #tpu.memory_space<vmem>>, vector<8x128xf32>
    tpu.vector_store %arg8[%c0_17, %c0_18], %21 {strides = array<i32>} : memref<8x128xf32, #tpu.memory_space<vmem>>, vector<8x128xf32>,
    return
  }
  func.func @transform_0(%arg0: i32) -> (i32, i32) {
    %c0_i32 = arith.constant 0 : i32
    %c0_i32_0 = arith.constant 0 : i32
    return %arg0, %c0_i32 : i32, i32
  }
  func.func @transform_1(%arg0: i32) -> (i32, i32) {
    %c0_i32 = arith.constant 0 : i32
    %c0_i32_0 = arith.constant 0 : i32
    %c0_i32_1 = arith.constant 0 : i32
    return %c0_i32, %c0_i32_0 : i32, i32
  }
  func.func @transform_2(%arg0: i32) -> (i32, i32) {
    %c0_i32 = arith.constant 0 : i32
    %c0_i32_0 = arith.constant 0 : i32
    %c0_i32_1 = arith.constant 0 : i32
    return %c0_i32, %c0_i32_0 : i32, i32
  }
  func.func @transform_3(%arg0: i32) -> (i32, i32) {
    %c0_i32 = arith.constant 0 : i32
    %c0_i32_0 = arith.constant 0 : i32
    %c0_i32_1 = arith.constant 0 : i32
    return %c0_i32, %c0_i32_0 : i32, i32
  }
  func.func @transform_4(%arg0: i32) -> (i32, i32) {
    %c0_i32 = arith.constant 0 : i32
    %c0_i32_0 = arith.constant 0 : i32
    %c0_i32_1 = arith.constant 0 : i32
    return %c0_i32, %c0_i32_0 : i32, i32
  }
  func.func @transform_5(%arg0: i32) -> (i32, i32) {
    %c0_i32 = arith.constant 0 : i32
    %c0_i32_0 = arith.constant 0 : i32
    %c0_i32_1 = arith.constant 0 : i32
    return %c0_i32, %c0_i32_0 : i32, i32
  }
  func.func @transform_6(%arg0: i32) -> (i32, i32) {
    %c0_i32 = arith.constant 0 : i32
    %c0_i32_0 = arith.constant 0 : i32
    %c0_i32_1 = arith.constant 0 : i32
    return %c0_i32, %c0_i32_0 : i32, i32
  }
  func.func @transform_7(%arg0: i32) -> (i32, i32) {
    %c0_i32 = arith.constant 0 : i32
    %c0_i32_0 = arith.constant 0 : i32
    return %c0_i32, %arg0 : i32, i32
  }
}

</mosaic_0001>

<bundles_post_ra>
// kernel: cirl_policy_forward.1
= control target key start
LH: loop header
LB: loop body
LE: loop exit
PB: predicated region body
PF: predicated region fallthrough
CT: control target
= control target key end

     0   :  { %vm48_vm0 = vcmask 130048   ;;  %s545_s1 = inlined_call_operand.vmem [shape: f32[16,128], index: 1, kind: input, shape index: {}]   ;;  %s546_s0 = inlined_call_operand.vmem [shape: f32[128,16], index: 0, kind: input, shape index: {}]   ;;  %s547_s2 = inlined_call_operand.vmem [shape: f32[1,128], index: 2, kind: input, shape index: {}]   ;;  %s548_s3 = inlined_call_operand.vmem [shape: f32[128,128], index: 3, kind: input, shape index: {}]   ;;  %s549_s4 = inlined_call_operand.vmem [shape: f32[1,128], index: 4, kind: input, shape index: {}]   ;;  %s550_s6 = inlined_call_operand.vmem [shape: f32[8,1], index: 6, kind: input, shape index: {}]   ;;  %s551_s5 = inlined_call_operand.vmem [shape: f32[8,128], index: 5, kind: input, shape index: {}]   ;;  %s552_s7 = inlined_call_operand.vmem [shape: f32[8,128], index: 7, kind: output, shape index: {}]  }
   0x1   :  { %v43_v0 = vld [vmem:[%s545_s1 + $0x8] sm:$0xff]  ;;  %v42_v1 = vld [vmem:[%s545_s1] sm:$0xff]  ;;  %v28_v4 = vld [vmem:[%s546_s0 + $0x10] sm:$0xff] }
   0x2   :  { %111 = vmatpush.msra.mxu0 %v43_v0  ;;  %v26_v2 = vld [vmem:[%s546_s0] sm:$0xff]  ;;  %v27_v3 = vld [vmem:[%s546_s0 + $0x8] sm:$0xff]  ;;  %v29_v5 = vld [vmem:[%s546_s0 + $0x18] sm:$0xff] }
   0x3   :  { %v30_v6 = vld [vmem:[%s546_s0 + $0x20] sm:$0xff]  ;;  %v31_v7 = vld [vmem:[%s546_s0 + $0x28] sm:$0xff]  ;;  %v32_v8 = vld [vmem:[%s546_s0 + $0x30] sm:$0xff] }
   0x4   :  { %112 = vmatpush.msra.mxu0 %v42_v1  ;;  %v33_v9 = vld [vmem:[%s546_s0 + $0x38] sm:$0xff]  ;;  %v34_v10 = vld [vmem:[%s546_s0 + $0x40] sm:$0xff]  ;;  %v192_v12 = vld [vmem:[%s548_s3 + $0x70] sm:$0xff] }
   0x5   :  { %312 = vmatmul.msk.f32.vlgmr.msra.gmra.mxu0 %vm48_vm0, %v26_v2  ;;  %v193_v11 = vld [vmem:[%s548_s3 + $0x78] sm:$0xff]  ;;  %v191_v13 = vld [vmem:[%s548_s3 + $0x68] sm:$0xff]  ;;  %v190_v15 = vld [vmem:[%s548_s3 + $0x60] sm:$0xff] }
   0x6   :  { %198 = vmatpush.msra.mxu1 %v193_v11  ;;  %328 = vmatpush.msra.mxu3 %v193_v11  ;;  %v35_v14 = vld [vmem:[%s546_s0 + $0x48] sm:$0xff]  ;;  %v189_v16 = vld [vmem:[%s548_s3 + $0x58] sm:$0xff]  ;;  %v188_v17 = vld [vmem:[%s548_s3 + $0x50] sm:$0xff] }
   0x7   :  { %v187_v18 = vld [vmem:[%s548_s3 + $0x48] sm:$0xff]  ;;  %v36_v19 = vld [vmem:[%s546_s0 + $0x50] sm:$0xff]  ;;  %v186_v20 = vld [vmem:[%s548_s3 + $0x40] sm:$0xff] }
   0x8   :  { %199 = vmatpush.msra.mxu1 %v192_v12  ;;  %329 = vmatpush.msra.mxu3 %v192_v12  ;;  %v185_v21 = vld [vmem:[%s548_s3 + $0x38] sm:$0xff]  ;;  %v184_v22 = vld [vmem:[%s548_s3 + $0x30] sm:$0xff]  ;;  %v183_v23 = vld [vmem:[%s548_s3 + $0x28] sm:$0xff] }
   0x9   :  { %v37_v24 = vld [vmem:[%s546_s0 + $0x58] sm:$0xff]  ;;  %v182_v25 = vld [vmem:[%s548_s3 + $0x20] sm:$0xff]  ;;  %v180_v27 = vld [vmem:[%s548_s3 + $0x10] sm:$0xff] }
   0xa   :  { %200 = vmatpush.msra.mxu1 %v191_v13  ;;  %330 = vmatpush.msra.mxu3 %v191_v13  ;;  %v181_v26 = vld [vmem:[%s548_s3 + $0x18] sm:$0xff]  ;;  %v38_v28 = vld [vmem:[%s546_s0 + $0x60] sm:$0xff]  ;;  %v179_v29 = vld [vmem:[%s548_s3 + $0x8] sm:$0xff] }
   0xb   :  { %v178_v30 = vld [vmem:[%s548_s3] sm:$0xff]  ;;  %v39_v31 = vld [vmem:[%s546_s0 + $0x68] sm:$0xff]  ;;  %v40_v32 = vld [vmem:[%s546_s0 + $0x70] sm:$0xff] }
   0xc   :  { %201 = vmatpush.msra.mxu1 %v190_v15  ;;  %331 = vmatpush.msra.mxu3 %v190_v15  ;;  %v41_v33 = vld [vmem:[%s546_s0 + $0x78] sm:$0xff]  ;;  %v512_v34 = vld [vmem:[%s547_s2] ss:$0 sm:$0xff] }
   0xd   :  { %313 = vmatmul.msk.f32.gmra.mxu0 %vm48_vm0, %v27_v3 }
   0xe   :  { %202 = vmatpush.msra.mxu1 %v189_v16  ;;  %332 = vmatpush.msra.mxu3 %v189_v16 }
  0x10   :  { %203 = vmatpush.msra.mxu1 %v188_v17  ;;  %333 = vmatpush.msra.mxu3 %v188_v17 }
  0x12   :  { %204 = vmatpush.msra.mxu1 %v187_v18  ;;  %334 = vmatpush.msra.mxu3 %v187_v18 }
  0x14   :  { %205 = vmatpush.msra.mxu1 %v186_v20  ;;  %335 = vmatpush.msra.mxu3 %v186_v20 }
  0x15   :  { %314 = vmatmul.msk.f32.gmra.mxu0 %vm48_vm0, %v28_v4 }
  0x16   :  { %206 = vmatpush.msra.mxu1 %v185_v21  ;;  %336 = vmatpush.msra.mxu3 %v185_v21 }
  0x18   :  { %207 = vmatpush.msra.mxu1 %v184_v22  ;;  %337 = vmatpush.msra.mxu3 %v184_v22 }
  0x1a   :  { %208 = vmatpush.msra.mxu1 %v183_v23  ;;  %338 = vmatpush.msra.mxu3 %v183_v23 }
  0x1c   :  { %209 = vmatpush.msra.mxu1 %v182_v25  ;;  %339 = vmatpush.msra.mxu3 %v182_v25 }
  0x1d   :  { %315 = vmatmul.msk.f32.gmra.mxu0 %vm48_vm0, %v29_v5 }
  0x1e   :  { %210 = vmatpush.msra.mxu1 %v181_v26  ;;  %340 = vmatpush.msra.mxu3 %v181_v26 }
  0x20   :  { %211 = vmatpush.msra.mxu1 %v180_v27  ;;  %341 = vmatpush.msra.mxu3 %v180_v27 }
  0x22   :  { %212 = vmatpush.msra.mxu1 %v179_v29  ;;  %342 = vmatpush.msra.mxu3 %v179_v29 }
  0x24   :  { %213 = vmatpush.msra.mxu1 %v178_v30  ;;  %343 = vmatpush.msra.mxu3 %v178_v30 }
  0x25   :  { %316 = vmatmul.msk.f32.gmra.mxu0 %vm48_vm0, %v30_v6 }
  0x2d   :  { %317 = vmatmul.msk.f32.gmra.mxu0 %vm48_vm0, %v31_v7 }
  0x35   :  { %318 = vmatmul.msk.f32.gmra.mxu0 %vm48_vm0, %v32_v8 }
  0x3d   :  { %319 = vmatmul.msk.f32.gmra.mxu0 %vm48_vm0, %v33_v9 }
  0x45   :  { %320 = vmatmul.msk.f32.gmra.mxu0 %vm48_vm0, %v34_v10 }
  0x4d   :  { %321 = vmatmul.msk.f32.gmra.mxu0 %vm48_vm0, %v35_v14 }
  0x55   :  { %322 = vmatmul.msk.f32.gmra.mxu0 %vm48_vm0, %v36_v19 }
  0x5d   :  { %323 = vmatmul.msk.f32.gmra.mxu0 %vm48_vm0, %v37_v24 }
  0x65   :  { %324 = vmatmul.msk.f32.gmra.mxu0 %vm48_vm0, %v38_v28 }
  0x6d   :  { %325 = vmatmul.msk.f32.gmra.mxu0 %vm48_vm0, %v39_v31  ;;  %v347_v31 = vld [vmem:[%s549_s4] ss:$0 sm:$0xff] }
  0x75   :  { %326 = vmatmul.msk.f32.gmra.mxu0 %vm48_vm0, %v40_v32 }
  0x7d   :  { %327 = vmatmul.msk.f32.gmra.mxu0 %vm48_vm0, %v41_v33 }
  0x82   :  { %v114_v35 = vpop.f32.mrf.mxu0 }
  0x83   :  { %v115_v36 = vadd.f32 %v512_v34, %v114_v35 }
  0x85   :  { %v162_v37 = vmax.f32 %v115_v36, 0.0 }
  0x87   :  { %214 = vmatmul.f32.vlgmr.msra.gmra.mxu1 %v162_v37 }
  0x8a   :  { %v117_v38 = vpop.f32.mrf.mxu0 }
  0x8b   :  { %v118_v39 = vadd.f32 %v512_v34, %v117_v38 }
  0x8d   :  { %v163_v40 = vmax.f32 %v118_v39, 0.0 }
  0x8f   :  { %217 = vmatmul.f32.gmra.mxu1 %v163_v40 }
  0x92   :  { %v120_v41 = vpop.f32.mrf.mxu0 }
  0x93   :  { %v121_v42 = vadd.f32 %v512_v34, %v120_v41 }
  0x95   :  { %v164_v43 = vmax.f32 %v121_v42, 0.0 }
  0x97   :  { %220 = vmatmul.f32.gmra.mxu1 %v164_v43 }
  0x9a   :  { %v123_v44 = vpop.f32.mrf.mxu0 }
  0x9b   :  { %v124_v45 = vadd.f32 %v512_v34, %v123_v44 }
  0x9d   :  { %v165_v46 = vmax.f32 %v124_v45, 0.0 }
  0x9f   :  { %223 = vmatmul.f32.gmra.mxu1 %v165_v46 }
  0xa2   :  { %v126_v47 = vpop.f32.mrf.mxu0 }
  0xa3   :  { %v127_v48 = vadd.f32 %v512_v34, %v126_v47 }
  0xa5   :  { %v166_v49 = vmax.f32 %v127_v48, 0.0 }
  0xa7   :  { %226 = vmatmul.f32.gmra.mxu1 %v166_v49 }
  0xaa   :  { %v129_v50 = vpop.f32.mrf.mxu0 }
  0xab   :  { %v130_v51 = vadd.f32 %v512_v34, %v129_v50 }
  0xad   :  { %v167_v52 = vmax.f32 %v130_v51, 0.0 }
  0xaf   :  { %229 = vmatmul.f32.gmra.mxu1 %v167_v52 }
  0xb2   :  { %v132_v53 = vpop.f32.mrf.mxu0 }
  0xb3   :  { %v133_v54 = vadd.f32 %v512_v34, %v132_v53 }
  0xb5   :  { %v168_v55 = vmax.f32 %v133_v54, 0.0 }
  0xb7   :  { %232 = vmatmul.f32.gmra.mxu1 %v168_v55  ;;  %v280_v55 = vld [vmem:[%s550_s6] sm:$0xff] }
  0xba   :  { %v135_v56 = vpop.f32.mrf.mxu0 }
  0xbb   :  { %v136_v57 = vadd.f32 %v512_v34, %v135_v56  ;;  %v350_v56 = vmov 0  }
  0xbc   :  { %345 = vset.pattern.permute.xlu0 %v350_v56 }
  0xbd   :  { %v169_v58 = vmax.f32 %v136_v57, 0.0  ;;  %283 = vperm.xlu0 %345, %v280_v55  }
  0xbf   :  { %235 = vmatmul.f32.gmra.mxu1 %v169_v58 }
  0xc2   :  { %v138_v59 = vpop.f32.mrf.mxu0 }
  0xc3   :  { %v139_v60 = vadd.f32 %v512_v34, %v138_v59 }
  0xc5   :  { %v170_v61 = vmax.f32 %v139_v60, 0.0 }
  0xc7   :  { %238 = vmatmul.f32.gmra.mxu1 %v170_v61 }
  0xca   :  { %v141_v62 = vpop.f32.mrf.mxu0 }
  0xcb   :  { %v142_v63 = vadd.f32 %v512_v34, %v141_v62 }
  0xcd   :  { %v171_v0 = vmax.f32 %v142_v63, 0.0 }
  0xcf   :  { %241 = vmatmul.f32.vlgmr.msra.gmra.mxu3 %v171_v0 }
  0xd2   :  { %v144_v1 = vpop.f32.mrf.mxu0 }
  0xd3   :  { %v145_v2 = vadd.f32 %v512_v34, %v144_v1 }
  0xd5   :  { %v172_v3 = vmax.f32 %v145_v2, 0.0 }
  0xd7   :  { %244 = vmatmul.f32.gmra.mxu3 %v172_v3 }
  0xda   :  { %v147_v4 = vpop.f32.mrf.mxu0 }
  0xdb   :  { %v148_v5 = vadd.f32 %v512_v34, %v147_v4 }
  0xdd   :  { %v173_v6 = vmax.f32 %v148_v5, 0.0 }
  0xdf   :  { %247 = vmatmul.f32.gmra.mxu3 %v173_v6  ;;  %v279_v6 = vld [vmem:[%s551_s5] sm:$0xff] }
  0xe2   :  { %v150_v7 = vpop.f32.mrf.mxu0 }
  0xe3   :  { %v151_v8 = vadd.f32 %v512_v34, %v150_v7 }
  0xe5   :  { %v174_v9 = vmax.f32 %v151_v8, 0.0 }
  0xe7   :  { %250 = vmatmul.f32.gmra.mxu3 %v174_v9 }
  0xea   :  { %v153_v10 = vpop.f32.mrf.mxu0 }
  0xeb   :  { %v154_v11 = vadd.f32 %v512_v34, %v153_v10 }
  0xed   :  { %v175_v12 = vmax.f32 %v154_v11, 0.0 }
  0xef   :  { %253 = vmatmul.f32.gmra.mxu3 %v175_v12 }
  0xf2   :  { %v156_v13 = vpop.f32.mrf.mxu0 }
  0xf3   :  { %v157_v14 = vadd.f32 %v512_v34, %v156_v13 }
  0xf5   :  { %v176_v15 = vmax.f32 %v157_v14, 0.0 }
  0xf7   :  { %256 = vmatmul.f32.gmra.mxu3 %v176_v15 }
  0xfa   :  { %v159_v16 = vpop.f32.mrf.mxu0 }
  0xfb   :  { %v160_v17 = vadd.f32 %v512_v34, %v159_v16 }
  0xfd   :  { %v177_v18 = vmax.f32 %v160_v17, 0.0 }
  0xff   :  { %259 = vmatmul.f32.gmra.mxu3 %v177_v18 }
 0x104   :  { %v530_v19 = vpop.f32.mrf.mxu1 }
 0x105   :  { %v216_v3 = vadd.f32 %v347_v31, %v530_v19 }
 0x107   :  { %v263_v5 = vmax.f32 %v216_v3, 0.0 }
 0x10c   :  { %v218_v21 = vpop.f32.mrf.mxu1 }
 0x10d   :  { %v219_v1 = vadd.f32 %v347_v31, %v218_v21 }
 0x10f   :  { %v264_v4 = vmax.f32 %v219_v1, 0.0 }
 0x114   :  { %v221_v23 = vpop.f32.mrf.mxu1 }
 0x115   :  { %v222_v63 = vadd.f32 %v347_v31, %v221_v23 }
 0x117   :  { %v265_v2 = vmax.f32 %v222_v63, 0.0 }
 0x11c   :  { %v224_v25 = vpop.f32.mrf.mxu1 }
 0x11d   :  { %v225_v61 = vadd.f32 %v347_v31, %v224_v25 }
 0x11f   :  { %v266_v0 = vmax.f32 %v225_v61, 0.0 }
 0x124   :  { %v227_v27 = vpop.f32.mrf.mxu1 }
 0x125   :  { %v228_v59 = vadd.f32 %v347_v31, %v227_v27 }
 0x127   :  { %v267_v62 = vmax.f32 %v228_v59, 0.0 }
 0x12c   :  { %v230_v30 = vpop.f32.mrf.mxu1 }
 0x12d   :  { %v231_v57 = vadd.f32 %v347_v31, %v230_v30 }
 0x12f   :  { %v268_v60 = vmax.f32 %v231_v57, 0.0  ;;  %v284_v7 = vpop.permute.xlu0 %283 }
 0x134   :  { %v233_v36 = vpop.f32.mrf.mxu1 }
 0x135   :  { %v234_v53 = vadd.f32 %v347_v31, %v233_v36 }
 0x137   :  { %v269_v58 = vmax.f32 %v234_v53, 0.0 }
 0x13c   :  { %v236_v41 = vpop.f32.mrf.mxu1 }
 0x13d   :  { %v237_v51 = vadd.f32 %v347_v31, %v236_v41 }
 0x13f   :  { %v270_v54 = vmax.f32 %v237_v51, 0.0 }
 0x144   :  { %v239_v48 = vpop.f32.mrf.mxu1 }
 0x145   :  { %v240_v49 = vadd.f32 %v347_v31, %v239_v48 }
 0x147   :  { %v271_v52 = vmax.f32 %v240_v49, 0.0 }
 0x152   :  { %v242_v20 = vpop.f32.mrf.mxu3 }
 0x153   :  { %v243_v46 = vadd.f32 %v347_v31, %v242_v20 }
 0x155   :  { %v272_v50 = vmax.f32 %v243_v46, 0.0 }
 0x15a   :  { %v245_v22 = vpop.f32.mrf.mxu3 }
 0x15b   :  { %v246_v44 = vadd.f32 %v347_v31, %v245_v22 }
 0x15d   :  { %v273_v47 = vmax.f32 %v246_v44, 0.0 }
 0x162   :  { %v248_v24 = vpop.f32.mrf.mxu3 }
 0x163   :  { %v249_v42 = vadd.f32 %v347_v31, %v248_v24 }
 0x165   :  { %v274_v45 = vmax.f32 %v249_v42, 0.0 }
 0x16a   :  { %v251_v26 = vpop.f32.mrf.mxu3 }
 0x16b   :  { %v252_v39 = vadd.f32 %v347_v31, %v251_v26 }
 0x16d   :  { %v275_v43 = vmax.f32 %v252_v39, 0.0 }
 0x172   :  { %v254_v28 = vpop.f32.mrf.mxu3 }
 0x173   :  { %v255_v37 = vadd.f32 %v347_v31, %v254_v28 }
 0x175   :  { %v276_v40 = vmax.f32 %v255_v37, 0.0 }
 0x17a   :  { %v257_v29 = vpop.f32.mrf.mxu3 }
 0x17b   :  { %v258_v34 = vadd.f32 %v347_v31, %v257_v29 }
 0x17d   :  { %v277_v38 = vmax.f32 %v258_v34, 0.0 }
 0x182   :  { %v260_v32 = vpop.f32.mrf.mxu3 }
 0x183   :  { %v261_v33 = vadd.f32 %v347_v31, %v260_v32 }
 0x185   :  { %v278_v35 = vmax.f32 %v261_v33, 0.0 }
 0x187   :  { %286 = vmatpush.xpose.msra.mxu2 %v278_v35 }
 0x18b   :  { %287 = vmatpush.xpose.msra.mxu2 %v277_v38 }
 0x18f   :  { %288 = vmatpush.xpose.msra.mxu2 %v276_v40 }
 0x193   :  { %289 = vmatpush.xpose.msra.mxu2 %v275_v43 }
 0x197   :  { %290 = vmatpush.xpose.msra.mxu2 %v274_v45 }
 0x19b   :  { %291 = vmatpush.xpose.msra.mxu2 %v273_v47 }
 0x19f   :  { %292 = vmatpush.xpose.msra.mxu2 %v272_v50 }
 0x1a3   :  { %293 = vmatpush.xpose.msra.mxu2 %v271_v52 }
 0x1a7   :  { %294 = vmatpush.xpose.msra.mxu2 %v270_v54 }
 0x1ab   :  { %295 = vmatpush.xpose.msra.mxu2 %v269_v58 }
 0x1af   :  { %296 = vmatpush.xpose.msra.mxu2 %v268_v60 }
 0x1b3   :  { %297 = vmatpush.xpose.msra.mxu2 %v267_v62 }
 0x1b7   :  { %298 = vmatpush.xpose.msra.mxu2 %v266_v0 }
 0x1bb   :  { %299 = vmatpush.xpose.msra.mxu2 %v265_v2 }
 0x1bf   :  { %300 = vmatpush.xpose.msra.mxu2 %v264_v4 }
 0x1c3   :  { %301 = vmatpush.xpose.msra.mxu2 %v263_v5 }
 0x1c6   :  { %302 = vmatmul.f32.vlgmr.msra.gmra.mxu2 %v279_v6 }
 0x249   :  { %v303_v8 = vpop.f32.mrf.mxu2 }
 0x24a   :  { %v304_v9 = vadd.f32 %v303_v8, %v284_v7 }
 0x24c   :  { %348 = vtanh.f32 %v304_v9 }
 0x252   :  { %v349_v10 = vpop.eup %348 }
 0x253   :  { %307 = vst [vmem:[%s552_s7] sm:$0xff] %v349_v10 }

</bundles_post_ra>
